<compile_context>
chip_gen: v5e
topology: v5e:2x2
jax: 0.10.0
libtpu: 0.0.40
codegen_flags: <defaults>
</compile_context>

<pallas_src>
import functools
import math

import jax
import jax.numpy as jnp
from jax.experimental import pallas as pl
from jax.experimental.pallas import tpu as pltpu


def _round_up(x, m):
    return ((x + m - 1) // m) * m


def _pad_dim(dim, tile_pref):
    """Pad `dim` up to a multiple of the chosen tile.

    tile_pref is a multiple of 128; the returned tile is min(tile_pref,
    round_up(dim, 128)) and always divides the returned padded dim.
    """
    d128 = _round_up(dim, 128)
    tile = min(tile_pref, d128)
    return _round_up(dim, tile), tile


def _mm_body(a_ref, b_ref, o_ref, *, tk, b_resident):
    k = pl.program_id(2)

    @pl.when(k == 0)
    def _():
        o_ref[...] = jnp.zeros_like(o_ref)

    if b_resident:
        # B holds the full contraction dim in VMEM; slice the k-th chunk.
        off = pl.multiple_of(k * tk, tk)
        b_blk = b_ref[pl.ds(off, tk), :]
    else:
        b_blk = b_ref[...]

    # Accumulate directly into the k-resident f32 output block (no scratch).
    o_ref[...] += jnp.dot(a_ref[...], b_blk, preferred_element_type=jnp.float32)


def _mm_kernel(a_ref, b_ref, o_ref, *, tk, b_resident):
    _mm_body(a_ref, b_ref, o_ref, tk=tk, b_resident=b_resident)


def _mm_bias_kernel(a_ref, b_ref, bias_ref, o_ref, *, tk, b_resident):
    _mm_body(a_ref, b_ref, o_ref, tk=tk, b_resident=b_resident)

    @pl.when(pl.program_id(2) == pl.num_programs(2) - 1)
    def _():
        # Bias added once on the final k step; (1, tn) broadcasts over rows.
        o_ref[...] += bias_ref[...]


def _tiled_matmul(a, b, bias2d=None, *, tm, tn, tk,
                  resident_budget_bytes=24 * 1024 * 1024):
    """out = a @ b (+ bias2d), f32 output.

    a: [M, K], b: [K, N], bias2d: [1, N] or None.  All dims are multiples of
    the corresponding tiles.  B is kept fully resident along K in VMEM when
    its double-buffered footprint fits `resident_budget_bytes`.
    """
    M, K = a.shape
    K2, N = b.shape
    assert K == K2
    assert M % tm == 0 and N % tn == 0 and K % tk == 0

    # Double-buffered VMEM footprint with a K-resident B operand.
    resident_bytes = 2 * (tm * tk * a.dtype.itemsize
                          + K * tn * b.dtype.itemsize
                          + tm * tn * 4)
    b_resident = resident_bytes <= resident_budget_bytes

    ni, nj, nk = M // tm, N // tn, K // tk
    grid = (ni, nj, nk)

    a_spec = pl.BlockSpec((tm, tk), lambda i, j, k: (i, k))
    if b_resident:
        # i- and k-invariant: support stays in VMEM, no per-row-tile re-reads.
        b_spec = pl.BlockSpec((K, tn), lambda i, j, k: (0, j))
        b_bytes = K * N * b.dtype.itemsize * (1 if nj == 1 else ni)
    else:
        b_spec = pl.BlockSpec((tk, tn), lambda i, j, k: (k, j))
        b_bytes = K * N * b.dtype.itemsize * ni
    out_spec = pl.BlockSpec((tm, tn), lambda i, j, k: (i, j))

    bytes_accessed = (M * K * a.dtype.itemsize + b_bytes + M * N * 4
                      + (N * 4 if bias2d is not None else 0))
    cost = pl.CostEstimate(flops=2 * M * K * N, transcendentals=0,
                           bytes_accessed=int(bytes_accessed))

    if bias2d is not None:
        assert bias2d.shape == (1, N)
        kernel = functools.partial(_mm_bias_kernel, tk=tk, b_resident=b_resident)
        in_specs = [a_spec, b_spec,
                    pl.BlockSpec((1, tn), lambda i, j, k: (0, j))]
        operands = (a, b, bias2d)
    else:
        kernel = functools.partial(_mm_kernel, tk=tk, b_resident=b_resident)
        in_specs = [a_spec, b_spec]
        operands = (a, b)

    return pl.pallas_call(
        kernel,
        out_shape=jax.ShapeDtypeStruct((M, N), jnp.float32),
        grid_spec=pltpu.PrefetchScalarGridSpec(
            num_scalar_prefetch=0,
            grid=grid,
            in_specs=in_specs,
            out_specs=out_spec,
        ),
        compiler_params=pltpu.CompilerParams(
            dimension_semantics=("parallel", "parallel", "arbitrary"),
            vmem_limit_bytes=32 * 1024 * 1024,
        ),
        cost_estimate=cost,
    )(*operands)


def graph_convolution(x, adj, weight, bias=None, *,
                      tm=512, tn=512, tk=512, adj_dtype=None):
    """x: [N, F_in], adj: [N, N] (dense), weight: [F_in, F_out], bias: [F_out] or None.

    adj_dtype: optionally store adj/support in bf16 for the HBM-bound stage 2
    (v5e/v6e bandwidth lever); accumulation stays f32.  Default None = exact f32.
    """
    N, F_in = x.shape
    F_in2, F_out = weight.shape
    assert F_in == F_in2 and adj.shape == (N, N)
    f32 = jnp.float32

    # Zero-pad every dim to a multiple of its chosen tile (lane-dense stores,
    # full MXU lanes).  Zero rows/cols contribute nothing; output is sliced.
    Np, t_node = _pad_dim(N, tm)
    Fin_p, tk1 = _pad_dim(F_in, tk)
    Fout_p, tn_ = _pad_dim(F_out, tn)

    x_p = jnp.pad(x.astype(f32), ((0, Np - N), (0, Fin_p - F_in)))
    w_p = jnp.pad(weight.astype(f32), ((0, Fin_p - F_in), (0, Fout_p - F_out)))
    adj_p = jnp.pad(adj.astype(f32), ((0, Np - N), (0, Np - N)))

    # Stage-2 row tile: keep >= 2 i-tiles when possible so both v7x
    # TensorCores get work via the "parallel" i axis.
    tm2 = t_node
    if Np // tm2 < 2 and tm2 > 128:
        tm2 //= 2
    tk2 = t_node  # node dim is padded to a multiple of t_node, so this divides Np

    # Stage 1 (hoisted, done once): support = X @ W  (no bias -> no zero-bias DMA).
    support = _tiled_matmul(x_p, w_p, None, tm=tm2, tn=tn_, tk=tk1)

    if adj_dtype is not None:
        adj_p = adj_p.astype(adj_dtype)
        support = support.astype(adj_dtype)

    b_p = None
    if bias is not None:
        b_p = jnp.pad(bias.astype(f32), (0, Fout_p - F_out)).reshape(1, Fout_p)

    # Stage 2: out = adj @ support (+ bias).  HBM-bound on adj; support is
    # held resident in VMEM and not re-streamed per row tile of adj.
    out_p = _tiled_matmul(adj_p, support, b_p, tm=tm2, tn=tn_, tk=tk2)

    return out_p[:N, :F_out]


if __name__ == "__main__":
    # Small, module-consistent shapes.
    N = 8             # number of graph nodes
    in_features = 16
    out_features = 32

    key = jax.random.PRNGKey(0)
    kx, kadj, kw, kb = jax.random.split(key, 4)

    # Deterministic parameter init matching reset_parameters():
    # uniform(-stdv, stdv) with stdv = 1/sqrt(out_features).
    stdv = 1.0 / math.sqrt(out_features)
    weight = jax.random.uniform(kw, (in_features, out_features),
                                minval=-stdv, maxval=stdv, dtype=jnp.float32)
    bias = jax.random.uniform(kb, (out_features,),
                              minval=-stdv, maxval=stdv, dtype=jnp.float32)

    # Example inputs: node features and a (dense) row-normalized adjacency.
    # TODO(synk): torch.spmm with a sparse adj is handled here as a dense matmul.
    x = jax.random.normal(kx, (N, in_features), dtype=jnp.float32)
    adj_raw = jax.random.uniform(kadj, (N, N), dtype=jnp.float32)
    adj = adj_raw / jnp.sum(adj_raw, axis=1, keepdims=True)

    out = graph_convolution(x, adj, weight, bias)
    out = jax.block_until_ready(out)

    # Pure-JAX reference checks (with and without bias).
    ref = adj @ (x @ weight) + bias
    assert out.shape == (N, out_features)
    assert jnp.allclose(out, ref, atol=1e-5, rtol=1e-5)

    out_nb = jax.block_until_ready(graph_convolution(x, adj, weight, None))
    ref_nb = adj @ (x @ weight)
    assert jnp.allclose(out_nb, ref_nb, atol=1e-5, rtol=1e-5)

    print("KERNEL_OK")
</pallas_src>

<mosaic_0001>
module attributes {stable_mosaic.version = 11 : i64} {
  func.func @_mm_kernel(%arg0: i32, %arg1: i32, %arg2: i32, %arg3: memref<128x128xf32, #tpu.memory_space<vmem>>, %arg4: memref<128x128xf32, #tpu.memory_space<vmem>>, %arg5: memref<128x128xf32, #tpu.memory_space<vmem>>) attributes {dimension_semantics = [#tpu.dimension_semantics<parallel>, #tpu.dimension_semantics<parallel>, #tpu.dimension_semantics<arbitrary>], iteration_bounds = array<i64: 1, 1, 1>, scalar_prefetch = 0 : i64, scratch_operands = 0 : i64, tpu.core_type = #tpu.core_type<tc>, window_params = [{transform_indices = @transform_0, window_bounds = array<i64: 128, 128>}, {transform_indices = @transform_1, window_bounds = array<i64: 128, 128>}, {transform_indices = @transform_2, window_bounds = array<i64: 128, 128>}]} {
    %c0_i32 = arith.constant 0 : i32
    %0 = arith.cmpi eq, %arg2, %c0_i32 : i32
    %1 = arith.extui %0 : i1 to i32
    %c0_i32_0 = arith.constant 0 : i32
    %2 = arith.cmpi ne, %1, %c0_i32_0 : i32
    scf.if %2 {
      %cst_7 = arith.constant 0.000000e+00 : f32
      %12 = vector.broadcast %cst_7 : f32 to vector<128x128xf32>
      %c0_8 = arith.constant 0 : index
      %c0_9 = arith.constant 0 : index
      %13 = vector.load %arg5[%c0_8, %c0_9] : memref<128x128xf32, #tpu.memory_space<vmem>>, vector<128x128xf32>
      tpu.vector_store %arg5[%c0_8, %c0_9], %12 {strides = array<i32>} : memref<128x128xf32, #tpu.memory_space<vmem>>, vector<128x128xf32>,
    } else {
    }
    %c128_i32 = arith.constant 128 : i32
    %3 = arith.muli %arg2, %c128_i32 : i32
    %4 = tpu.assume_multiple %3, 128 : i32
    %5 = arith.index_cast %4 : i32 to index
    %c0 = arith.constant 0 : index
    %6 = vector.load %arg4[%5, %c0] : memref<128x128xf32, #tpu.memory_space<vmem>>, vector<128x128xf32>
    %c0_1 = arith.constant 0 : index
    %c0_2 = arith.constant 0 : index
    %7 = vector.load %arg5[%c0_1, %c0_2] : memref<128x128xf32, #tpu.memory_space<vmem>>, vector<128x128xf32>
    %c0_3 = arith.constant 0 : index
    %c0_4 = arith.constant 0 : index
    %8 = vector.load %arg3[%c0_3, %c0_4] : memref<128x128xf32, #tpu.memory_space<vmem>>, vector<128x128xf32>
    %cst = arith.constant dense<0.000000e+00> : vector<128x128xf32>
    %9 = tpu.matmul %8, %6, %cst {dimension_numbers = #tpu.dot_dimension_numbers<[1], [0], [0], [1], [0, 0, 1, 1], [], []>} : vector<128x128xf32>, vector<128x128xf32>, vector<128x128xf32> -> vector<128x128xf32>
    %10 = arith.addf %7, %9 : vector<128x128xf32>
    %c0_5 = arith.constant 0 : index
    %c0_6 = arith.constant 0 : index
    %11 = vector.load %arg5[%c0_5, %c0_6] : memref<128x128xf32, #tpu.memory_space<vmem>>, vector<128x128xf32>
    tpu.vector_store %arg5[%c0_5, %c0_6], %10 {strides = array<i32>} : memref<128x128xf32, #tpu.memory_space<vmem>>, vector<128x128xf32>,
    return
  }
  func.func @transform_0(%arg0: i32, %arg1: i32, %arg2: i32) -> (i32, i32) {
    %c0_i32 = arith.constant 0 : i32
    return %arg0, %arg2 : i32, i32
  }
  func.func @transform_1(%arg0: i32, %arg1: i32, %arg2: i32) -> (i32, i32) {
    %c0_i32 = arith.constant 0 : i32
    %c0_i32_0 = arith.constant 0 : i32
    return %c0_i32, %arg1 : i32, i32
  }
  func.func @transform_2(%arg0: i32, %arg1: i32, %arg2: i32) -> (i32, i32) {
    %c0_i32 = arith.constant 0 : i32
    return %arg0, %arg1 : i32, i32
  }
}

</mosaic_0001>

<bundles_post_ra>
// kernel: tpu_custom_call.1
= control target key start
LH: loop header
LB: loop body
LE: loop exit
PB: predicated region body
PF: predicated region fallthrough
CT: control target
= control target key end

     0   :  { %7 = vsyncpa [#allocation3], 0  ;;  %s401_s0 = inlined_call_operand.hbm [shape: f32[128,128], index: 0, kind: input, shape index: {}]   ;;  %s402_s1 = inlined_call_operand.hbm [shape: f32[128,128], index: 1, kind: input, shape index: {}]   ;;  %s403_s2 = inlined_call_operand.hbm [shape: f32[128,128], index: 2, kind: output, shape index: {}]  }
   0x1   :  { %8 = vsyncpa [#allocation6], 0 }
   0x2   :  { %9 = vsyncpa [#allocation4], 0  ;;  %s14_s11 = sshll.u32 %s401_s0, 4  ;;  %s363_s12 = smov [#allocation2]   ;;  %s15_s11 = int_to_ptr.hbm [resolvable:$true] %s14_s11 }
   0x3   :  { %s16_s13 = sshll.u32 %s363_s12, 4  ;;  %s27_s16 = sshll.u32 %s402_s1, 4  ;;  %s17_s13 = int_to_ptr.vmem [resolvable:$true] %s16_s13  ;;  %s28_s16 = int_to_ptr.hbm [resolvable:$true] %s27_s16 }
   0x4   :  { %s364_s17 = smov 128   ;;  %s365_s18 = smov 8  }
   0x5   :  { %22 = dma.hbm_to_vmem [thread:$0]  %s15_s11, 2048, %s17_s13, [#allocation3], %s364_s17, %s364_s17, %s365_s18  }
   0x6   :  { %s366_s19 = smov [#allocation5]  }
   0x7   :  { %s29_s20 = sshll.u32 %s366_s19, 4  ;;  %s30_s20 = int_to_ptr.vmem [resolvable:$true] %s29_s20 }
   0x8   :  { %35 = dma.hbm_to_vmem [thread:$0]  %s28_s16, 2048, %s30_s20, [#allocation6], %s364_s17, %s364_s17, %s365_s18  }
   0x9   :  { %357 = dma.done.wait [#allocation3], 2048  }
   0xa   :  { %358 = vsyncadd [#allocation3], 4294965248 }
   0xb   :  { %359 = dma.done.wait [#allocation6], 2048  }
   0xc   :  { %360 = vsyncadd [#allocation6], 4294965248  ;;  %v81_v0 = vld [vmem:[#allocation5 + $0x78] sm:$0xff]  ;;  %v80_v1 = vld [vmem:[#allocation5 + $0x70] sm:$0xff]  ;;  %s367_s0 = smov [#allocation7]   ;;  %s217_s23 = sshll.u32 %s403_s2, 4  ;;  %s218_s23 = int_to_ptr.hbm [resolvable:$true] %s217_s23 }
   0xd   :  { %232 = vmatpush.msra.mxu2 %v81_v0  ;;  %233 = vmatpush.msra.mxu3 %v81_v0  ;;  %v79_v2 = vld [vmem:[#allocation5 + $0x68] sm:$0xff]  ;;  %v78_v3 = vld [vmem:[#allocation5 + $0x60] sm:$0xff]  ;;  %v77_v4 = vld [vmem:[#allocation5 + $0x58] sm:$0xff]  ;;  %s215_s1 = sshll.u32 %s367_s0, 4  ;;  %s216_s1 = int_to_ptr.vmem [resolvable:$true] %s215_s1 }
   0xe   :  { %114 = vmatpush.msra.mxu0 %v81_v0  ;;  %231 = vmatpush.msra.mxu1 %v81_v0  ;;  %v76_v5 = vld [vmem:[#allocation5 + $0x50] sm:$0xff]  ;;  %v75_v6 = vld [vmem:[#allocation5 + $0x48] sm:$0xff]  ;;  %v74_v7 = vld [vmem:[#allocation5 + $0x40] sm:$0xff] }
   0xf   :  { %235 = vmatpush.msra.mxu2 %v80_v1  ;;  %236 = vmatpush.msra.mxu3 %v80_v1  ;;  %v73_v8 = vld [vmem:[#allocation5 + $0x38] sm:$0xff]  ;;  %v72_v9 = vld [vmem:[#allocation5 + $0x30] sm:$0xff]  ;;  %v71_v10 = vld [vmem:[#allocation5 + $0x28] sm:$0xff] }
  0x10   :  { %115 = vmatpush.msra.mxu0 %v80_v1  ;;  %234 = vmatpush.msra.mxu1 %v80_v1  ;;  %v70_v11 = vld [vmem:[#allocation5 + $0x20] sm:$0xff]  ;;  %v69_v12 = vld [vmem:[#allocation5 + $0x18] sm:$0xff]  ;;  %v68_v13 = vld [vmem:[#allocation5 + $0x10] sm:$0xff] }
  0x11   :  { %238 = vmatpush.msra.mxu2 %v79_v2  ;;  %239 = vmatpush.msra.mxu3 %v79_v2  ;;  %v67_v14 = vld [vmem:[#allocation5 + $0x8] sm:$0xff]  ;;  %v66_v15 = vld [vmem:[#allocation5] sm:$0xff]  ;;  %v108_v24 = vld [vmem:[#allocation2 + $0x50] sm:$0xff] }
  0x12   :  { %116 = vmatpush.msra.mxu0 %v79_v2  ;;  %237 = vmatpush.msra.mxu1 %v79_v2  ;;  %v106_v16 = vld [vmem:[#allocation2 + $0x40] sm:$0xff]  ;;  %v107_v20 = vld [vmem:[#allocation2 + $0x48] sm:$0xff]  ;;  %v112_v25 = vld [vmem:[#allocation2 + $0x70] sm:$0xff] }
  0x13   :  { %241 = vmatpush.msra.mxu2 %v78_v3  ;;  %242 = vmatpush.msra.mxu3 %v78_v3  ;;  %v110_v17 = vld [vmem:[#allocation2 + $0x60] sm:$0xff]  ;;  %v111_v21 = vld [vmem:[#allocation2 + $0x68] sm:$0xff]  ;;  %v100_v26 = vld [vmem:[#allocation2 + $0x10] sm:$0xff] }
  0x14   :  { %117 = vmatpush.msra.mxu0 %v78_v3  ;;  %240 = vmatpush.msra.mxu1 %v78_v3  ;;  %v98_v18 = vld [vmem:[#allocation2] sm:$0xff]  ;;  %v99_v22 = vld [vmem:[#allocation2 + $0x8] sm:$0xff]  ;;  %v104_v27 = vld [vmem:[#allocation2 + $0x30] sm:$0xff] }
  0x15   :  { %244 = vmatpush.msra.mxu2 %v77_v4  ;;  %245 = vmatpush.msra.mxu3 %v77_v4  ;;  %v102_v19 = vld [vmem:[#allocation2 + $0x20] sm:$0xff]  ;;  %v103_v23 = vld [vmem:[#allocation2 + $0x28] sm:$0xff]  ;;  %v109_v28 = vld [vmem:[#allocation2 + $0x58] sm:$0xff] }
  0x16   :  { %118 = vmatpush.msra.mxu0 %v77_v4  ;;  %243 = vmatpush.msra.mxu1 %v77_v4  ;;  %v113_v29 = vld [vmem:[#allocation2 + $0x78] sm:$0xff] }
  0x17   :  { %247 = vmatpush.msra.mxu2 %v76_v5  ;;  %248 = vmatpush.msra.mxu3 %v76_v5  ;;  %v101_v30 = vld [vmem:[#allocation2 + $0x18] sm:$0xff] }
  0x18   :  { %119 = vmatpush.msra.mxu0 %v76_v5  ;;  %246 = vmatpush.msra.mxu1 %v76_v5  ;;  %v105_v31 = vld [vmem:[#allocation2 + $0x38] sm:$0xff] }
  0x19   :  { %250 = vmatpush.msra.mxu2 %v75_v6  ;;  %251 = vmatpush.msra.mxu3 %v75_v6 }
  0x1a   :  { %120 = vmatpush.msra.mxu0 %v75_v6  ;;  %249 = vmatpush.msra.mxu1 %v75_v6 }
  0x1b   :  { %253 = vmatpush.msra.mxu2 %v74_v7  ;;  %254 = vmatpush.msra.mxu3 %v74_v7 }
  0x1c   :  { %121 = vmatpush.msra.mxu0 %v74_v7  ;;  %252 = vmatpush.msra.mxu1 %v74_v7 }
  0x1d   :  { %256 = vmatpush.msra.mxu2 %v73_v8  ;;  %257 = vmatpush.msra.mxu3 %v73_v8 }
  0x1e   :  { %122 = vmatpush.msra.mxu0 %v73_v8  ;;  %255 = vmatpush.msra.mxu1 %v73_v8 }
  0x1f   :  { %259 = vmatpush.msra.mxu2 %v72_v9  ;;  %260 = vmatpush.msra.mxu3 %v72_v9 }
  0x20   :  { %123 = vmatpush.msra.mxu0 %v72_v9  ;;  %258 = vmatpush.msra.mxu1 %v72_v9 }
  0x21   :  { %262 = vmatpush.msra.mxu2 %v71_v10  ;;  %263 = vmatpush.msra.mxu3 %v71_v10 }
  0x22   :  { %124 = vmatpush.msra.mxu0 %v71_v10  ;;  %261 = vmatpush.msra.mxu1 %v71_v10 }
  0x23   :  { %265 = vmatpush.msra.mxu2 %v70_v11  ;;  %266 = vmatpush.msra.mxu3 %v70_v11 }
  0x24   :  { %125 = vmatpush.msra.mxu0 %v70_v11  ;;  %264 = vmatpush.msra.mxu1 %v70_v11 }
  0x25   :  { %268 = vmatpush.msra.mxu2 %v69_v12  ;;  %269 = vmatpush.msra.mxu3 %v69_v12 }
  0x26   :  { %126 = vmatpush.msra.mxu0 %v69_v12  ;;  %267 = vmatpush.msra.mxu1 %v69_v12 }
  0x27   :  { %271 = vmatpush.msra.mxu2 %v68_v13  ;;  %272 = vmatpush.msra.mxu3 %v68_v13 }
  0x28   :  { %127 = vmatpush.msra.mxu0 %v68_v13  ;;  %270 = vmatpush.msra.mxu1 %v68_v13 }
  0x29   :  { %274 = vmatpush.msra.mxu2 %v67_v14  ;;  %275 = vmatpush.msra.mxu3 %v67_v14 }
  0x2a   :  { %128 = vmatpush.msra.mxu0 %v67_v14  ;;  %273 = vmatpush.msra.mxu1 %v67_v14 }
  0x2b   :  { %277 = vmatpush.msra.mxu2 %v66_v15  ;;  %278 = vmatpush.msra.mxu3 %v66_v15 }
  0x2c   :  { %154 = vmatmul.f32.vlgmr.msra.gmra.mxu2 %v106_v16  ;;  %166 = vmatmul.f32.vlgmr.msra.gmra.mxu3 %v110_v17 }
  0x2d   :  { %129 = vmatpush.msra.mxu0 %v66_v15  ;;  %276 = vmatpush.msra.mxu1 %v66_v15 }
  0x2e   :  { %130 = vmatmul.f32.vlgmr.msra.gmra.mxu0 %v98_v18  ;;  %142 = vmatmul.f32.vlgmr.msra.gmra.mxu1 %v102_v19 }
  0x34   :  { %157 = vmatmul.f32.gmra.mxu2 %v107_v20  ;;  %169 = vmatmul.f32.gmra.mxu3 %v111_v21 }
  0x36   :  { %133 = vmatmul.f32.gmra.mxu0 %v99_v22  ;;  %145 = vmatmul.f32.gmra.mxu1 %v103_v23 }
  0x3c   :  { %160 = vmatmul.f32.gmra.mxu2 %v108_v24  ;;  %172 = vmatmul.f32.gmra.mxu3 %v112_v25 }
  0x3e   :  { %136 = vmatmul.f32.gmra.mxu0 %v100_v26  ;;  %148 = vmatmul.f32.gmra.mxu1 %v104_v27 }
  0x44   :  { %163 = vmatmul.f32.gmra.mxu2 %v109_v28  ;;  %175 = vmatmul.f32.gmra.mxu3 %v113_v29 }
  0x46   :  { %139 = vmatmul.f32.gmra.mxu0 %v101_v30  ;;  %151 = vmatmul.f32.gmra.mxu1 %v105_v31 }
  0xab   :  { %v131_v32 = vpop.f32.mrf.mxu0  ;;  %v143_v33 = vpop.f32.mrf.mxu1 }
  0xac   :  { %195 = vst [vmem:[#allocation7] sm:$0xff] %v131_v32 }
  0xad   :  { %199 = vst [vmem:[#allocation7 + $0x20] sm:$0xff] %v143_v33 }
  0xaf   :  { %v155_v34 = vpop.f32.mrf.mxu2  ;;  %v167_v35 = vpop.f32.mrf.mxu3 }
  0xb0   :  { %203 = vst [vmem:[#allocation7 + $0x40] sm:$0xff] %v155_v34 }
  0xb1   :  { %207 = vst [vmem:[#allocation7 + $0x60] sm:$0xff] %v167_v35 }
  0xb3   :  { %v134_v36 = vpop.f32.mrf.mxu0  ;;  %v146_v37 = vpop.f32.mrf.mxu1 }
  0xb4   :  { %196 = vst [vmem:[#allocation7 + $0x8] sm:$0xff] %v134_v36 }
  0xb5   :  { %200 = vst [vmem:[#allocation7 + $0x28] sm:$0xff] %v146_v37 }
  0xb7   :  { %v158_v38 = vpop.f32.mrf.mxu2  ;;  %v170_v39 = vpop.f32.mrf.mxu3 }
  0xb8   :  { %204 = vst [vmem:[#allocation7 + $0x48] sm:$0xff] %v158_v38 }
  0xb9   :  { %208 = vst [vmem:[#allocation7 + $0x68] sm:$0xff] %v170_v39 }
  0xbb   :  { %v137_v40 = vpop.f32.mrf.mxu0  ;;  %v149_v41 = vpop.f32.mrf.mxu1 }
  0xbc   :  { %197 = vst [vmem:[#allocation7 + $0x10] sm:$0xff] %v137_v40 }
  0xbd   :  { %201 = vst [vmem:[#allocation7 + $0x30] sm:$0xff] %v149_v41 }
  0xbf   :  { %v161_v42 = vpop.f32.mrf.mxu2  ;;  %v173_v43 = vpop.f32.mrf.mxu3 }
  0xc0   :  { %205 = vst [vmem:[#allocation7 + $0x50] sm:$0xff] %v161_v42 }
  0xc1   :  { %209 = vst [vmem:[#allocation7 + $0x70] sm:$0xff] %v173_v43 }
  0xc3   :  { %v140_v44 = vpop.f32.mrf.mxu0  ;;  %v152_v45 = vpop.f32.mrf.mxu1 }
  0xc4   :  { %198 = vst [vmem:[#allocation7 + $0x18] sm:$0xff] %v140_v44 }
  0xc5   :  { %202 = vst [vmem:[#allocation7 + $0x38] sm:$0xff] %v152_v45 }
  0xc7   :  { %v164_v46 = vpop.f32.mrf.mxu2  ;;  %v176_v47 = vpop.f32.mrf.mxu3 }
  0xc8   :  { %206 = vst [vmem:[#allocation7 + $0x58] sm:$0xff] %v164_v46 }
  0xc9   :  { %210 = vst [vmem:[#allocation7 + $0x78] sm:$0xff] %v176_v47 }
  0xca   :  { %223 = dma.vmem_to_hbm [thread:$0]  %s216_s1, 2048, %s218_s23, [#allocation4], %s364_s17, %s364_s17, %s365_s18  }
  0xcb   :  { %361 = dma.done.wait [#allocation4], 2048  }
  0xcc   :  { %362 = vsyncadd [#allocation4], 4294965248 }
  0xcd   :  { %228 = vsyncpa [#allocation3], 1 }
  0xce   :  { %229 = vsyncpa [#allocation6], 1 }
  0xcf   :  { %230 = vsyncpa [#allocation4], 1 }

</bundles_post_ra>
